<compile_context>
chip_gen: v6e
topology: v6e:2x2x1
jax: 0.10.0
libtpu: 0.0.40
codegen_flags: <defaults>
</compile_context>

<pallas_src>
import jax
import jax.numpy as jnp
import numpy as np
from jax import lax
from jax.experimental import pallas as pl
from jax.experimental.pallas import tpu as pltpu


def _lovasz_kernel(err_ref, gt_ref, pcg_ref, ppos_ref, colp1_ref, tri_ref,
                   gts_ref, out_ref):
    # err_ref  : (TM, B) f32   errors, globally sorted descending (pad = -1e30)
    # gt_ref   : (TM, B) bf16  labels permuted by the same sort (pad = 0)
    # pcg_ref  : (TM, 1) f32   # positives strictly before each row (global)
    # ppos_ref : (TM, 1) f32   global element index of each row start (r * B)
    # colp1_ref: (1,  B) f32   lane index + 1 (constant, VMEM resident)
    # tri_ref  : (B,  B) bf16  upper-triangular (i <= j) mask (constant)
    # gts_ref  : (1,  1) f32   total number of positives
    # out_ref  : (8,  B) f32   per-tile partial sums (reduced in the wrapper)
    tm, bl = err_ref.shape

    err = err_ref[...]
    gt = gt_ref[...]
    prev_cg = pcg_ref[...]                  # (TM, 1)
    ppos = ppos_ref[...]                    # (TM, 1)
    colp1 = colp1_ref[...]                  # (1, B)
    gts = gts_ref[...]                      # (1, 1)

    # Lane-wise inclusive prefix sum of gt via one MXU matmul (exact for 0/1
    # labels: bf16 holds 0/1 exactly, accumulation is f32).
    intra = jnp.dot(gt, tri_ref[...], preferred_element_type=jnp.float32)

    cum_gt = prev_cg + intra                # global inclusive cumsum of gt
    gpos = ppos + colp1                     # global flat index + 1 (f32)
    # cumsum(1 - gt)[k] = (k + 1) - cumsum(gt)[k]  (exact for 0/1 labels)
    cum_not = gpos - cum_gt
    jaccard = 1.0 - (gts - cum_gt) / (gts + cum_not)     # union >= 1

    # Lovasz gradient = first difference of jaccard in flat sorted order.
    prev_lane = pltpu.roll(jaccard, shift=1, axis=1)     # col j>=1 -> col j-1
    # Column 0's predecessor is the last element of the previous row; its
    # jaccard is recomputed analytically from the wrapper-provided prefixes.
    prev_jac0 = 1.0 - (gts - prev_cg) / (gts + ppos - prev_cg)   # (TM, 1)
    prev = jnp.where(colp1 == 1.0, prev_jac0, prev_lane)
    prev = jnp.where(gpos == 1.0, 0.0, prev)             # grad[0] = jaccard[0]
    grad = jaccard - prev

    contrib = jnp.maximum(err, 0.0) * grad               # padded entries -> 0
    # Sublane-folded lane-dense partial; full reduce happens in the wrapper.
    out_ref[...] = jnp.sum(contrib.reshape(tm // 8, 8, bl), axis=0)


def lovasz_hinge_loss(logits, labels, *, block_rows=512, block_lanes=128):
    """Binary Lovasz hinge loss. logits: [N] float, labels: [N] {0,1}."""
    n = logits.shape[0]
    if n == 0:
        return jnp.float32(0.0)

    logits = logits.astype(jnp.float32)
    # The matcher always passes binarized labels ((tgt_mask > 0.5).float());
    # the bf16 MXU prefix sum / algebraic cum_not identity require exact 0/1,
    # so binarize defensively here.
    labels_f = (labels > 0.5).astype(jnp.float32)

    signs = 2.0 * labels_f - 1.0
    errors = 1.0 - logits * signs
    gts = jnp.sum(labels_f).reshape(1, 1)   # total positives (f32, exact)

    bl = block_lanes
    r_total = -(-n // bl)                           # rows of (rows, 128) layout
    br = max(8, ((block_rows + 7) // 8) * 8)
    tm = min(br, ((r_total + 7) // 8) * 8)          # rows/step, multiple of 8
    num_tiles = -(-r_total // tm)
    r_pad = num_tiles * tm
    n_pad = r_pad * bl
    pad = n_pad - n

    # TODO(synk): descending sort has no Pallas TPU primitive; one stable
    # multi-operand lax.sort stays in the wrapper. Pad key is +1e30 so padding
    # lands at the tail (padded errors -1e30 -> relu 0, padded labels 0, so
    # padding contributes exactly 0 to the loss).
    neg_key = jnp.pad(-errors, (0, pad), constant_values=1e30)
    lab = jnp.pad(labels_f, (0, pad), constant_values=0.0)
    neg_sorted, gt_sorted = lax.sort((neg_key, lab), num_keys=1)
    err2 = (-neg_sorted).reshape(r_pad, bl)
    gt2_f32 = gt_sorted.reshape(r_pad, bl)
    gt2 = gt2_f32.astype(jnp.bfloat16)              # half-width gt HBM stream

    # Per-row exclusive prefix of positive counts + global row-start indices
    # (precomputed here so the kernel has no serial carry -> parallel grid).
    row_tot = jnp.sum(gt2_f32, axis=1)                               # (r_pad,)
    pcg = (jnp.cumsum(row_tot) - row_tot).reshape(r_pad, 1)          # exclusive
    ppos = (jnp.arange(r_pad, dtype=jnp.float32) * bl).reshape(r_pad, 1)
    colp1 = (jnp.arange(bl, dtype=jnp.float32) + 1.0).reshape(1, bl)
    li = jnp.arange(bl, dtype=jnp.int32)
    tri = (li[:, None] <= li[None, :]).astype(jnp.bfloat16)          # (B, B)

    out = pl.pallas_call(
        _lovasz_kernel,
        out_shape=jax.ShapeDtypeStruct((num_tiles * 8, bl), jnp.float32),
        grid=(num_tiles,),
        in_specs=[
            pl.BlockSpec((tm, bl), lambda t: (t, 0)),    # err
            pl.BlockSpec((tm, bl), lambda t: (t, 0)),    # gt (bf16)
            pl.BlockSpec((tm, 1), lambda t: (t, 0)),     # pcg
            pl.BlockSpec((tm, 1), lambda t: (t, 0)),     # ppos
            pl.BlockSpec((1, bl), lambda t: (0, 0)),     # colp1 (resident)
            pl.BlockSpec((bl, bl), lambda t: (0, 0)),    # tri   (resident)
            pl.BlockSpec((1, 1), lambda t: (0, 0)),      # gts   (resident)
        ],
        out_specs=pl.BlockSpec((8, bl), lambda t: (t, 0)),
        compiler_params=pltpu.CompilerParams(
            dimension_semantics=("parallel",)),
    )(err2, gt2, pcg, ppos, colp1, tri, gts)
    return jnp.sum(out)


def _lovasz_hinge_loss_ref(logits, labels):
    """Pure-JAX reference mirroring the PyTorch module (for verification)."""
    labels_f = labels.astype(jnp.float32)
    signs = 2.0 * labels_f - 1.0
    errors = 1.0 - logits.astype(jnp.float32) * signs
    perm = jnp.argsort(-errors)
    errors_sorted = errors[perm]
    gt_sorted = labels_f[perm]
    gts = gt_sorted.sum()
    intersection = gts - jnp.cumsum(gt_sorted)
    union = gts + jnp.cumsum(1.0 - gt_sorted)
    jaccard = 1.0 - intersection / union
    grad = jnp.concatenate([jaccard[:1], jaccard[1:] - jaccard[:-1]])
    return jnp.sum(jnp.maximum(errors_sorted, 0.0) * grad)


if __name__ == "__main__":
    key = jax.random.PRNGKey(0)

    def check(n, label_p, block_rows=512, note=""):
        k1, k2 = jax.random.split(jax.random.fold_in(key, n))
        logits = jax.random.normal(k1, (n,), dtype=jnp.float32) * 2.0
        labels = (jax.random.uniform(k2, (n,)) < label_p).astype(jnp.float32)
        loss = jax.block_until_ready(
            lovasz_hinge_loss(logits, labels, block_rows=block_rows))
        ref = jax.block_until_ready(_lovasz_hinge_loss_ref(logits, labels))
        assert np.allclose(np.asarray(loss), np.asarray(ref),
                           rtol=1e-4, atol=1e-4), (note, loss, ref)

    check(100, 0.5, note="single tile, lane padding 100 -> 128")
    check(2500, 0.3, block_rows=8, note="multi-tile grid, per-tile partials")
    check(3000, 0.5, block_rows=16, note="multi-tile grid, tm=16")
    check(64, 0.0, note="no positives (gts == 0) edge case")
    check(64, 1.0, note="all positives")

    print("KERNEL_OK")
</pallas_src>

<mosaic_0001>
module attributes {stable_mosaic.version = 11 : i64} {
  func.func @_lovasz_kernel(%arg0: i32, %arg1: memref<8x128xf32, #tpu.memory_space<vmem>>, %arg2: memref<8x128xbf16, #tpu.memory_space<vmem>>, %arg3: memref<8x1xf32, #tpu.memory_space<vmem>>, %arg4: memref<8x1xf32, #tpu.memory_space<vmem>>, %arg5: memref<1x128xf32, #tpu.memory_space<vmem>>, %arg6: memref<128x128xbf16, #tpu.memory_space<vmem>>, %arg7: memref<1x1xf32, #tpu.memory_space<vmem>>, %arg8: memref<8x128xf32, #tpu.memory_space<vmem>>) attributes {dimension_semantics = [#tpu.dimension_semantics<parallel>], iteration_bounds = array<i64: 1>, scalar_prefetch = 0 : i64, scratch_operands = 0 : i64, tpu.core_type = #tpu.core_type<tc>, window_params = [{transform_indices = @transform_0, window_bounds = array<i64: 8, 128>}, {transform_indices = @transform_1, window_bounds = array<i64: 8, 128>}, {transform_indices = @transform_2, window_bounds = array<i64: 8, 1>}, {transform_indices = @transform_3, window_bounds = array<i64: 8, 1>}, {pipeline_mode = #tpu.pipeline_mode<synchronous>, transform_indices = @transform_4, window_bounds = array<i64: 1, 128>}, {pipeline_mode = #tpu.pipeline_mode<synchronous>, transform_indices = @transform_5, window_bounds = array<i64: 128, 128>}, {pipeline_mode = #tpu.pipeline_mode<synchronous>, transform_indices = @transform_6, window_bounds = array<i64: 1, 1>}, {transform_indices = @transform_7, window_bounds = array<i64: 8, 128>}]} {
    %c0 = arith.constant 0 : index
    %c0_0 = arith.constant 0 : index
    %0 = vector.load %arg1[%c0, %c0_0] : memref<8x128xf32, #tpu.memory_space<vmem>>, vector<8x128xf32>
    %c0_1 = arith.constant 0 : index
    %c0_2 = arith.constant 0 : index
    %1 = vector.load %arg2[%c0_1, %c0_2] : memref<8x128xbf16, #tpu.memory_space<vmem>>, vector<8x128xbf16>
    %c0_3 = arith.constant 0 : index
    %c0_4 = arith.constant 0 : index
    %2 = vector.load %arg3[%c0_3, %c0_4] : memref<8x1xf32, #tpu.memory_space<vmem>>, vector<8x1xf32>
    %c0_5 = arith.constant 0 : index
    %c0_6 = arith.constant 0 : index
    %3 = vector.load %arg4[%c0_5, %c0_6] : memref<8x1xf32, #tpu.memory_space<vmem>>, vector<8x1xf32>
    %c0_7 = arith.constant 0 : index
    %c0_8 = arith.constant 0 : index
    %4 = vector.load %arg5[%c0_7, %c0_8] : memref<1x128xf32, #tpu.memory_space<vmem>>, vector<1x128xf32>
    %c0_9 = arith.constant 0 : index
    %c0_10 = arith.constant 0 : index
    %5 = vector.load %arg7[%c0_9, %c0_10] : memref<1x1xf32, #tpu.memory_space<vmem>>, vector<1x1xf32>
    %c0_11 = arith.constant 0 : index
    %c0_12 = arith.constant 0 : index
    %6 = vector.load %arg6[%c0_11, %c0_12] : memref<128x128xbf16, #tpu.memory_space<vmem>>, vector<128x128xbf16>
    %cst = arith.constant dense<0.000000e+00> : vector<8x128xf32>
    %7 = tpu.matmul %1, %6, %cst {dimension_numbers = #tpu.dot_dimension_numbers<[1], [0], [0], [1], [0, 0, 1, 1], [], []>} : vector<8x128xbf16>, vector<128x128xbf16>, vector<8x128xf32> -> vector<8x128xf32>
    %8 = vector.broadcast %2 : vector<8x1xf32> to vector<8x128xf32>
    %9 = arith.addf %8, %7 : vector<8x128xf32>
    %10 = vector.broadcast %3 : vector<8x1xf32> to vector<8x128xf32>
    %11 = vector.broadcast %4 : vector<1x128xf32> to vector<8x128xf32>
    %12 = arith.addf %10, %11 : vector<8x128xf32>
    %13 = arith.subf %12, %9 : vector<8x128xf32>
    %14 = vector.broadcast %5 : vector<1x1xf32> to vector<8x128xf32>
    %15 = arith.subf %14, %9 : vector<8x128xf32>
    %16 = vector.broadcast %5 : vector<1x1xf32> to vector<8x128xf32>
    %17 = arith.addf %16, %13 : vector<8x128xf32>
    %18 = arith.divf %15, %17 : vector<8x128xf32>
    %cst_13 = arith.constant 1.000000e+00 : f32
    %19 = vector.broadcast %cst_13 : f32 to vector<8x128xf32>
    %20 = arith.subf %19, %18 : vector<8x128xf32>
    %c1_i32 = arith.constant 1 : i32
    %21 = tpu.dynamic_rotate %20 by %c1_i32 dim 1 : vector<8x128xf32>, i32 -> vector<8x128xf32>
    %22 = vector.broadcast %5 : vector<1x1xf32> to vector<8x1xf32>
    %23 = arith.subf %22, %2 : vector<8x1xf32>
    %24 = vector.broadcast %5 : vector<1x1xf32> to vector<8x1xf32>
    %25 = arith.addf %24, %3 : vector<8x1xf32>
    %26 = arith.subf %25, %2 : vector<8x1xf32>
    %27 = arith.divf %23, %26 : vector<8x1xf32>
    %cst_14 = arith.constant 1.000000e+00 : f32
    %28 = vector.broadcast %cst_14 : f32 to vector<8x1xf32>
    %29 = arith.subf %28, %27 : vector<8x1xf32>
    %cst_15 = arith.constant 1.000000e+00 : f32
    %30 = vector.broadcast %cst_15 : f32 to vector<1x128xf32>
    %31 = arith.cmpf oeq, %4, %30 : vector<1x128xf32>
    %32 = vector.shape_cast %31 : vector<1x128xi1> to vector<1x128xi1>
    %33 = vector.broadcast %32 : vector<1x128xi1> to vector<8x128xi1>
    %34 = vector.shape_cast %29 : vector<8x1xf32> to vector<8x1xf32>
    %35 = vector.broadcast %34 : vector<8x1xf32> to vector<8x128xf32>
    %36 = arith.select %33, %35, %21 : vector<8x128xi1>, vector<8x128xf32>
    %cst_16 = arith.constant 1.000000e+00 : f32
    %37 = vector.broadcast %cst_16 : f32 to vector<8x128xf32>
    %38 = arith.cmpf oeq, %12, %37 : vector<8x128xf32>
    %cst_17 = arith.constant 0.000000e+00 : f32
    %39 = vector.broadcast %cst_17 : f32 to vector<8x128xf32>
    %40 = arith.select %38, %39, %36 : vector<8x128xi1>, vector<8x128xf32>
    %41 = arith.subf %20, %40 : vector<8x128xf32>
    %cst_18 = arith.constant 0.000000e+00 : f32
    %42 = vector.broadcast %cst_18 : f32 to vector<8x128xf32>
    %43 = arith.maximumf %0, %42 : vector<8x128xf32>
    %44 = arith.mulf %43, %41 : vector<8x128xf32>
    %45 = vector.shape_cast %44 : vector<8x128xf32> to vector<1x8x128xf32>
    %cst_19 = arith.constant dense<0.000000e+00> : vector<8x128xf32>
    %46 = vector.multi_reduction <add>, %45, %cst_19 [0] : vector<1x8x128xf32> to vector<8x128xf32>
    %c0_20 = arith.constant 0 : index
    %c0_21 = arith.constant 0 : index
    %47 = vector.load %arg8[%c0_20, %c0_21] : memref<8x128xf32, #tpu.memory_space<vmem>>, vector<8x128xf32>
    tpu.vector_store %arg8[%c0_20, %c0_21], %46 {strides = array<i32>} : memref<8x128xf32, #tpu.memory_space<vmem>>, vector<8x128xf32>,
    return
  }
  func.func @transform_0(%arg0: i32) -> (i32, i32) {
    %c0_i32 = arith.constant 0 : i32
    %c0_i32_0 = arith.constant 0 : i32
    return %arg0, %c0_i32 : i32, i32
  }
  func.func @transform_1(%arg0: i32) -> (i32, i32) {
    %c0_i32 = arith.constant 0 : i32
    %c0_i32_0 = arith.constant 0 : i32
    return %arg0, %c0_i32 : i32, i32
  }
  func.func @transform_2(%arg0: i32) -> (i32, i32) {
    %c0_i32 = arith.constant 0 : i32
    %c0_i32_0 = arith.constant 0 : i32
    return %arg0, %c0_i32 : i32, i32
  }
  func.func @transform_3(%arg0: i32) -> (i32, i32) {
    %c0_i32 = arith.constant 0 : i32
    %c0_i32_0 = arith.constant 0 : i32
    return %arg0, %c0_i32 : i32, i32
  }
  func.func @transform_4(%arg0: i32) -> (i32, i32) {
    %c0_i32 = arith.constant 0 : i32
    %c0_i32_0 = arith.constant 0 : i32
    %c0_i32_1 = arith.constant 0 : i32
    return %c0_i32, %c0_i32_0 : i32, i32
  }
  func.func @transform_5(%arg0: i32) -> (i32, i32) {
    %c0_i32 = arith.constant 0 : i32
    %c0_i32_0 = arith.constant 0 : i32
    %c0_i32_1 = arith.constant 0 : i32
    return %c0_i32, %c0_i32_0 : i32, i32
  }
  func.func @transform_6(%arg0: i32) -> (i32, i32) {
    %c0_i32 = arith.constant 0 : i32
    %c0_i32_0 = arith.constant 0 : i32
    %c0_i32_1 = arith.constant 0 : i32
    return %c0_i32, %c0_i32_0 : i32, i32
  }
  func.func @transform_7(%arg0: i32) -> (i32, i32) {
    %c0_i32 = arith.constant 0 : i32
    %c0_i32_0 = arith.constant 0 : i32
    return %arg0, %c0_i32 : i32, i32
  }
}

</mosaic_0001>

<bundles_post_ra>
// kernel: tpu_custom_call.1
= control target key start
LH: loop header
LB: loop body
LE: loop exit
PB: predicated region body
PF: predicated region fallthrough
CT: control target
= control target key end

     0   :  { %s410_s0 = inlined_call_operand.vmem [shape: f32[8,128], index: 0, kind: input, shape index: {}]   ;;  %s411_s1 = inlined_call_operand.vmem [shape: bf16[8,128], index: 1, kind: input, shape index: {}]   ;;  %s412_s2 = inlined_call_operand.vmem [shape: f32[8,1], index: 2, kind: input, shape index: {}]   ;;  %s413_s3 = inlined_call_operand.vmem [shape: f32[8,1], index: 3, kind: input, shape index: {}]   ;;  %s414_s4 = inlined_call_operand.vmem [shape: f32[1,128], index: 4, kind: input, shape index: {}]   ;;  %s415_s5 = inlined_call_operand.hbm [shape: bf16[128,128], index: 5, kind: input, shape index: {}]   ;;  %s416_s6 = inlined_call_operand.<no memory space> [shape: f32[1,1], index: 6, kind: input, shape index: {}]   ;;  %s417_s7 = inlined_call_operand.hbm [shape: f32[8,128], index: 7, kind: output, shape index: {}]  }
   0x1   :  { %v12_v0 = vstv %s416_s6 }
   0x2   :  { %13 = vst [vmem:[#allocation2] sm:$0x1] %v12_v0 }
   0x3   :  { %14 = vsyncpa [#allocation4], 0 }
   0x4   :  { %15 = vsyncpa [#allocation5], 0  ;;  %s335_s26 = smov [#allocation3]  }
   0x5   :  { %s31_s27 = sshll.u32 %s335_s26, 4  ;;  %s32_s27 = int_to_ptr.vmem [resolvable:$true] %s31_s27 }
   0x6   :  { %s299_s28 = scalar_lea.vmem %s32_s27, 1024  ;;  %p304_p1 = scmp.lt.s32.totalorder %s32_s27, %s32_s27 }
   0x7   :  { %p300_p0 = scmp.ne.s32.totalorder %s32_s27, %s299_s28  ;;  %p305_p2 = scmp.lt.s32.totalorder %s299_s28, %s299_s28 }
   0x9   :  { %p306_p3 = por %p305_p2, %p304_p1 }
   0xb   :  { %p307_p4 = pnand %p306_p3, %p300_p0 }
   0xd   :  { %310 = shalt.err (!%p307_p4)
}
   0xe   :  { %s336_s29 = smov 64   ;;  %s337_s30 = smov 4  }
   0xf   :  { %37 = dma.hbm_to_vmem [thread:$0]  %s415_s5, 1024, %s32_s27, [#allocation4], %s336_s29, %s336_s29, %s337_s30  }
  0x10   :  { %331 = dma.done.wait [#allocation4], 1024  }
  0x11   :  { %332 = vsyncadd [#allocation4], 4294966272  ;;  %v338_v1 = vmov 0.0   ;;  %vm339_vm0 = vmmov 0   ;;  %v340_v2 = vmov 0   ;;  %v279_v3 = vld [vmem:[#allocation3 + $0x38] sm:$0xff]   ;;  %v166_v21 = vlaneseq }
  0x12   :  { %249 = vmatprep.subr.bf16.mxu0 %v338_v1  ;;  %265 = vmatprep.mubr.msk.bf16.mxu0 %vm339_vm0, %v338_v1  ;;  %v280_v4 = vld [vmem:[#allocation3 + $0x30] sm:$0xff]   ;;  %v281_v5 = vld [vmem:[#allocation3 + $0x28] sm:$0xff]   ;;  %v46_v6 = vld [vmem:[%s412_s2] sm:$0xff]  ;;  %s342_s15 = smov [#allocation6]  }
  0x13   :  { %277 = vset.pattern.permute.xlu0 %v340_v2  ;;  %278 = vset.pattern.permute.xlu1 %v340_v2  ;;  %v47_v7 = vld [vmem:[%s413_s3] sm:$0xff]  ;;  %v284_v13 = vld [vmem:[#allocation3 + $0x10] sm:$0xff]   ;;  %v285_v14 = vld [vmem:[#allocation3 + $0x8] sm:$0xff]   ;;  %v167_v22 = vshrl.u32 %v166_v21, 7  ;;  %s222_s16 = sshll.u32 %s342_s15, 4  ;;  %s223_s16 = int_to_ptr.vmem [resolvable:$true] %s222_s16 }
  0x14   :  { %250 = vmatpush3.bf16.msra.mxu0 %v279_v3  ;;  %156 = vperm.xlu0 %277, %v46_v6   ;;  %v239_v8 = vld [vmem:[#allocation2] ss:$0 sm:$0xff]  ;;  %v282_v9 = vld [vmem:[#allocation3 + $0x20] sm:$0xff]   ;;  %s311_s17 = scalar_lea.vmem %s223_s16, 128  ;;  %p316_p6 = scmp.lt.s32.totalorder %s223_s16, %s223_s16 }
  0x15   :  { %251 = vmatprep.subr.bf16.mxu0 %v338_v1  ;;  %179 = vperm.xlu1 %278, %v239_v8   ;;  %v191_v10 = vadd.f32 %v239_v8, %v47_v7  ;;  %v283_v12 = vld [vmem:[#allocation3 + $0x18] sm:$0xff]   ;;  %v190_v15 = vsub.f32 %v239_v8, %v46_v6  ;;  %v286_v16 = vld [vmem:[#allocation3] sm:$0xff]   ;;  %v168_v24 = vsub.s32 0, %v167_v22  ;;  %p312_p5 = scmp.ne.s32.totalorder %s223_s16, %s311_s17  ;;  %p317_p7 = scmp.lt.s32.totalorder %s311_s17, %s311_s17 }
  0x16   :  { %v45_v19 = vld [vmem:[%s411_s1] sm:$0xf]  ;;  %s341_s1 = smov 1  }
  0x17   :  { %v192_v11 = vsub.f32 %v191_v10, %v46_v6  ;;  %v48_v25 = vld [vmem:[%s414_s4] sm:$0x1]  ;;  %p318_p8 = por %p317_p7, %p316_p6 }
  0x18   :  { %252 = vmatpush3.bf16.msra.mxu0 %v280_v4  ;;  %162 = vperm.xlu0 %277, %v47_v7   ;;  %v169_v26 = vrot.slane %v48_v25, %v168_v24  ;;  %vm196_vm1 = vcmp.eq.f32.partialorder %v48_v25, 1.0  ;;  %v44_v43 = vld [vmem:[%s410_s0] sm:$0xff] }
  0x19   :  { %253 = vmatprep.subr.bf16.mxu0 %v338_v1  ;;  %287 = vrcp.f32 %v192_v11  ;;  %v197_v41 = vsel %vm196_vm1, 1, %v340_v2  ;;  %v212_v47 = vmax.f32 %v44_v43, 0.0  ;;  %p319_p9 = pnand %p318_p8, %p312_p5 }
  0x1a   :  { %v201_v42 = vrot.slane %v197_v41, %v168_v24 }
  0x1c   :  { %254 = vmatpush3.bf16.msra.mxu0 %v281_v5  ;;  %vm202_vm2 = vcmp.eq.s32.totalorder %v201_v42, 1 }
  0x1d   :  { %255 = vmatprep.subr.bf16.mxu0 %v338_v1 }
  0x20   :  { %256 = vmatpush3.bf16.msra.mxu0 %v282_v9 }
  0x21   :  { %257 = vmatprep.subr.bf16.mxu0 %v338_v1 }
  0x24   :  { %258 = vmatpush3.bf16.msra.mxu0 %v283_v12 }
  0x25   :  { %259 = vmatprep.subr.bf16.mxu0 %v338_v1 }
  0x26   :  { %v288_v17 = vpop.eup %287 }
  0x27   :  { %v194_v18 = vmul.f32 %v288_v17, %v190_v15 }
  0x28   :  { %260 = vmatpush3.bf16.msra.mxu0 %v284_v13 }
  0x29   :  { %261 = vmatprep.subr.bf16.mxu0 %v338_v1  ;;  %v195_v20 = vsub.f32 1.0, %v194_v18 }
  0x2b   :  { %205 = vperm.xlu1 %278, %v195_v20  }
  0x2c   :  { %262 = vmatpush3.bf16.msra.mxu0 %v285_v14 }
  0x2d   :  { %263 = vmatprep.subr.bf16.mxu0 %v338_v1 }
  0x30   :  { %264 = vmatpush3.bf16.msra.mxu0 %v286_v16 }
  0x33   :  { %266 = vmatmul.mubr.bf16.vlgmr.msra.gmra.mxu0 %v45_v19 }
  0x8f   :  { %v157_v23 = vpop.permute.xlu0 %156 }
  0x90   :  { %v180_v33 = vpop.permute.xlu1 %179 }
  0x93   :  { %v163_v27 = vpop.permute.xlu0 %162 }
  0x94   :  { %v171_v29 = vadd.f32 %v169_v26, %v163_v27 }
  0x96   :  { %vm209_vm3 = vcmp.eq.f32.partialorder %v171_v29, 1.0 }
  0xa6   :  { %v206_v44 = vpop.permute.xlu1 %205 }
  0xf3   :  { %v148_v28 = vpop.f32.mrf.mxu0 }
  0xf4   :  { %v159_v30 = vadd.f32 %v157_v23, %v148_v28 }
  0xf5   :  { %v267_v31 = vpop.f32.mrf.mxu0 }
  0xf6   :  { %v172_v32 = vsub.f32 %v171_v29, %v159_v30  ;;  %v182_v37 = vsub.f32 %v180_v33, %v159_v30 }
  0xf7   :  { %v151_v34 = vpop.f32.mrf.mxu0 }
  0xf8   :  { %v183_v35 = vadd.f32 %v180_v33, %v172_v32 }
  0xf9   :  { %v268_v36 = vpop.f32.mrf.mxu0 }
  0xfa   :  { %289 = vrcp.f32 %v183_v35 }
 0x107   :  { %v290_v38 = vpop.eup %289 }
 0x108   :  { %v185_v39 = vmul.f32 %v290_v38, %v182_v37 }
 0x10a   :  { %v186_v40 = vsub.f32 1.0, %v185_v39 }
 0x10c   :  { %187 = vrot.lane.b32.xlu0 %v186_v40, %s341_s1 }
 0x17e   :  { %v188_v45 = vpop.permute.xlu0 %187 }
 0x17f   :  { %v208_v46 = vsel %vm202_vm2, %v206_v44, %v188_v45 }
 0x180   :  { %v210_v48 = vsel %vm209_vm3, 0.0, %v208_v46 }
 0x181   :  { %v211_v49 = vsub.f32 %v186_v40, %v210_v48 }
 0x183   :  { %v213_v50 = vmul.f32 %v212_v47, %v211_v49 }
 0x185   :  { %215 = vst [vmem:[#allocation6] sm:$0xff] %v213_v50 }
 0x186   :  { %322 = shalt.err (!%p319_p9)
}
 0x187   :  { %225 = dma.vmem_to_hbm [thread:$0]  %s223_s16, 128, %s417_s7, [#allocation5]  }
 0x188   :  { %333 = dma.done.wait [#allocation5], 128  }
 0x189   :  { %334 = vsyncadd [#allocation5], 4294967168 }
 0x18a   :  { %229 = vsyncpa [#allocation4], 1 }
 0x18b   :  { %230 = vsyncpa [#allocation5], 1 }

</bundles_post_ra>
